<compile_context>
chip_gen: v5e
topology: v5e:2x2
jax: 0.10.0
libtpu: 0.0.40
codegen_flags: <defaults>
</compile_context>

<pallas_src>
import functools

import jax
import jax.numpy as jnp
from jax import lax
from jax.experimental import pallas as pl
from jax.experimental.pallas import tpu as pltpu

_TARGET_TILE_BYTES = 4 * 1024 * 1024   # ~4 MiB of HBM bytes per input tile
_MAX_TILE_C = 2048                     # lane width cap (multiple of 128)
_MAX_TILE_M = 2048                     # sublane cap (bounds unrolled reduce)
_ACC_ROWS = 8                          # accumulator sublane height


def _vmem_capacity_bytes():
    try:
        return int(pltpu.get_tpu_info().vmem_capacity_bytes)
    except Exception:
        return 64 << 20                # v7x per-core VMEM = smallest generation


def _choose_lane_width(total):
    """Largest multiple of 128 (<= _MAX_TILE_C) dividing the flattened size."""
    for w in range(_MAX_TILE_C, 127, -128):
        if total % w == 0:
            return w
    return None


def _vmem_estimate(tile_m, tile_c, itemsizes):
    elems = tile_m * tile_c
    in_bufs = sum(2 * elems * it for it in itemsizes)   # double-buffered inputs
    scratch = 4 * elems * 4                             # in-kernel f32 temporaries
    out_bufs = 4 * _ACC_ROWS * tile_c * 4               # accumulator blocks
    return in_bufs + scratch + out_bufs + (2 << 20)


def _choose_tiles(n_rows, n_cols, itemsizes, vmem_target):
    """(8,128)-legal (tile_m, tile_c) sized to the HBM budget and VMEM target."""
    tile_c = n_cols if n_cols <= _MAX_TILE_C else _MAX_TILE_C   # full dim or mult of 128
    elems_budget = max(_TARGET_TILE_BYTES // max(itemsizes[0], 1), 8 * 128)
    rows_budget = max(elems_budget // tile_c, 1)

    if n_rows <= 8 or n_rows <= rows_budget:
        tile_m = min(n_rows, _MAX_TILE_M) if n_rows > _MAX_TILE_M else n_rows
    else:
        tile_m = max(8, (rows_budget // 8) * 8)
    tile_m = min(tile_m, max(n_rows, 1)) if n_rows <= 8 else min(tile_m, _MAX_TILE_M)

    # Shrink until the conservative VMEM estimate fits the per-core target.
    while tile_m > 8 and _vmem_estimate(tile_m, tile_c, itemsizes) > vmem_target:
        tile_m = max(8, ((tile_m // 2) // 8) * 8)
    return tile_m, tile_c


def _make_kernel(has_weights, n_rows, n_cols, tile_m, tile_c,
                 nrow, ncol, half, n_split, acc_rows):
    ragged_rows = (n_rows % tile_m) != 0
    ragged_cols = (n_cols % tile_c) != 0
    has_dup = (n_split * half) != nrow           # logical row blocks past the end
    n_groups = tile_m // acc_rows if (tile_m % acc_rows == 0) else 1

    def kernel(*refs):
        if has_weights:
            x_ref, t_ref, w_ref, o_ref = refs
        else:
            x_ref, t_ref, o_ref = refs
            w_ref = None

        s = pl.program_id(0)     # row-split axis ("parallel", megacore)
        cb = pl.program_id(1)    # column block  ("parallel")
        i = pl.program_id(2)     # row block within split (reduction, innermost)
        rb = s * half + i        # logical row-block index

        @pl.when(i == 0)
        def _():
            o_ref[...] = jnp.zeros_like(o_ref)

        def accumulate(use_row_mask, use_col_mask):
            x = x_ref[...].astype(jnp.float32)
            t = t_ref[...].astype(jnp.float32)
            # Numerically-stable BCE with logits (PyTorch's formulation):
            #   loss = max(x, 0) - x*t + log(1 + exp(-|x|))
            loss = jnp.maximum(x, 0.0) - x * t + jnp.log1p(jnp.exp(-jnp.abs(x)))
            if has_weights:
                loss = loss * w_ref[...].astype(jnp.float32)

            if use_row_mask or use_col_mask:
                valid = None
                if use_row_mask:
                    rows = rb * tile_m + lax.broadcasted_iota(jnp.int32, loss.shape, 0)
                    valid = rows < n_rows
                if use_col_mask:
                    cols = cb * tile_c + lax.broadcasted_iota(jnp.int32, loss.shape, 1)
                    cmask = cols < n_cols
                    valid = cmask if valid is None else (valid & cmask)
                loss = jnp.where(valid, loss, 0.0)

            if n_groups > 1:
                # Vreg-aligned partial reduce into (acc_rows, tile_c) (pure VALU adds).
                part = loss[0:acc_rows, :]
                for g in range(1, n_groups):
                    part = part + loss[g * acc_rows:(g + 1) * acc_rows, :]
            else:
                part = loss
            o_ref[...] += part

        need_row_mask = ragged_rows or has_dup
        need_col_mask = ragged_cols

        if not (need_row_mask or need_col_mask):
            accumulate(False, False)
        else:
            row_edge = (nrow - 1) if ragged_rows else nrow
            special = None
            if need_row_mask:
                special = rb >= row_edge
            if need_col_mask:
                c = cb == (ncol - 1)
                special = c if special is None else (special | c)

            @pl.when(jnp.logical_not(special))
            def _():
                accumulate(False, False)       # unmasked fast path (interior blocks)

            @pl.when(special)
            def _():
                accumulate(need_row_mask, need_col_mask)   # edge / duplicate blocks

    return kernel


def _bce_partial_sums(x, t, w):
    """Per-lane-column partial sums of the elementwise loss, shape (S, C) f32."""
    n_rows, n_cols = x.shape
    inputs = (x, t) if w is None else (x, t, w)
    itemsizes = [a.dtype.itemsize for a in inputs]

    vmem_cap = _vmem_capacity_bytes()
    vmem_target = (vmem_cap * 2) // 3
    tile_m, tile_c = _choose_tiles(n_rows, n_cols, itemsizes, vmem_target)

    nrow = pl.cdiv(n_rows, tile_m)
    ncol = pl.cdiv(n_cols, tile_c)

    # Guarantee a >=2-extent "parallel" axis so a v7x megacore can shard the work;
    # on single-TC parts (v5e/v6e) the extra axis is harmless.
    n_split = 2 if (ncol == 1 and nrow >= 4) else 1
    half = pl.cdiv(nrow, n_split)
    has_dup = (n_split * half) != nrow

    acc_rows = _ACC_ROWS if (tile_m >= _ACC_ROWS and tile_m % _ACC_ROWS == 0) else tile_m

    kernel = _make_kernel(w is not None, n_rows, n_cols, tile_m, tile_c,
                          nrow, ncol, half, n_split, acc_rows)

    if has_dup:
        def row_block(s, i):
            return jnp.minimum(s * half + i, nrow - 1)   # clamp duplicate tail blocks
    else:
        def row_block(s, i):
            return s * half + i

    in_spec = pl.BlockSpec((tile_m, tile_c), lambda s, j, i: (row_block(s, i), j))
    in_specs = [in_spec] * len(inputs)
    out_spec = pl.BlockSpec((acc_rows, tile_c), lambda s, j, i: (s, j))

    estimate = _vmem_estimate(tile_m, tile_c, itemsizes)
    vmem_limit = int(min((vmem_cap * 3) // 4, max(32 << 20, estimate + (16 << 20))))

    call = pl.pallas_call(
        kernel,
        out_shape=jax.ShapeDtypeStruct((n_split * acc_rows, n_cols), jnp.float32),
        grid_spec=pltpu.PrefetchScalarGridSpec(
            num_scalar_prefetch=0,
            grid=(n_split, ncol, half),
            in_specs=in_specs,
            out_specs=out_spec,
        ),
        compiler_params=pltpu.CompilerParams(
            dimension_semantics=("parallel", "parallel", "arbitrary"),
            vmem_limit_bytes=vmem_limit,
        ),
    )
    return call(*inputs)


class MultiClassBCELoss:
    """JAX/Pallas port of the PyTorch MultiClassBCELoss module (forward only)."""

    def __init__(self, use_weight_mask=False, use_focal_weights=False,
                 focus_param=2, balance_param=0.25):
        self.use_weight_mask = use_weight_mask
        self.use_focal_weights = use_focal_weights
        self.focus_param = focus_param
        self.balance_param = balance_param

    @functools.partial(jax.jit, static_argnums=0)
    def __call__(self, outputs, targets, weights=None):
        assert outputs.ndim == targets.ndim
        assert outputs.shape[0] == targets.shape[0]
        assert outputs.shape[1] == targets.shape[1]
        if weights is not None:
            assert outputs.shape[0] == weights.shape[0]
            assert outputs.shape[1] == weights.shape[1]

        use_w = self.use_weight_mask and weights is not None
        total = outputs.size

        # Lane-dense 2-D view of the flattened buffer (mean is reshape-invariant).
        w_lanes = _choose_lane_width(total)
        if w_lanes is not None:
            rows = total // w_lanes
            x2 = outputs.reshape(rows, w_lanes)
            t2 = targets.reshape(rows, w_lanes)
            w2 = weights.reshape(rows, w_lanes) if use_w else None
        else:
            # Fallback: (N, C_flat) view; in-kernel edge masks handle raggedness.
            n = outputs.shape[0]
            x2 = outputs.reshape(n, -1)
            t2 = targets.reshape(n, -1)
            w2 = weights.reshape(n, -1) if use_w else None

        partials = _bce_partial_sums(x2, t2, w2)          # (S, C) f32 partial sums
        bce_loss = jnp.sum(partials) / jnp.float32(total)

        if self.use_focal_weights:
            # Focal scaling applied to the scalar mean BCE (matches the PyTorch module).
            logpt = -bce_loss
            pt = jnp.exp(logpt)
            focal_loss = -((1.0 - pt) ** self.focus_param) * logpt
            return self.balance_param * focal_loss
        return bce_loss


def _reference(outputs, targets, weights, *, use_weight_mask,
               use_focal_weights, focus_param, balance_param):
    x = outputs.astype(jnp.float32)
    t = targets.astype(jnp.float32)
    loss = jnp.maximum(x, 0.0) - x * t + jnp.log1p(jnp.exp(-jnp.abs(x)))
    if use_weight_mask and weights is not None:
        loss = loss * weights.astype(jnp.float32)
    bce = jnp.mean(loss)
    if use_focal_weights:
        logpt = -bce
        pt = jnp.exp(logpt)
        return balance_param * (-((1.0 - pt) ** focus_param) * logpt)
    return bce


if __name__ == "__main__":
    key = jax.random.PRNGKey(0)
    k1, k2, k3, k4, k5 = jax.random.split(key, 5)

    ok = True

    # Case 1: 4-D segmentation-style inputs (batch=2, channels=4, 16x16).
    B, Cc, H, W = 2, 4, 16, 16
    outputs = jax.random.normal(k1, (B, Cc, H, W), dtype=jnp.float32)
    targets = (jax.random.uniform(k2, (B, Cc, H, W)) > 0.5).astype(jnp.float32)
    got = jax.block_until_ready(MultiClassBCELoss()(outputs, targets))
    want = _reference(outputs, targets, None, use_weight_mask=False,
                      use_focal_weights=False, focus_param=2, balance_param=0.25)
    ok &= bool(jnp.allclose(got, want, rtol=1e-5, atol=1e-5))

    # Case 2: 2-D multi-label (batch=8, classes=128) with weight mask + focal.
    B2, C2 = 8, 128
    outputs2 = jax.random.normal(k3, (B2, C2), dtype=jnp.float32)
    targets2 = (jax.random.uniform(k4, (B2, C2)) > 0.5).astype(jnp.float32)
    weights2 = jax.random.uniform(k5, (B2, C2), dtype=jnp.float32) + 0.5
    loss_fn2 = MultiClassBCELoss(use_weight_mask=True, use_focal_weights=True)
    got2 = jax.block_until_ready(loss_fn2(outputs2, targets2, weights2))
    want2 = _reference(outputs2, targets2, weights2, use_weight_mask=True,
                       use_focal_weights=True, focus_param=2, balance_param=0.25)
    ok &= bool(jnp.allclose(got2, want2, rtol=1e-5, atol=1e-5))

    # Case 3: sizes not divisible by 128 (N=10, C=200) -> (N, C_flat) fallback path.
    B3, C3 = 10, 200
    outputs3 = jax.random.normal(k1, (B3, C3), dtype=jnp.float32)
    targets3 = (jax.random.uniform(k2, (B3, C3)) > 0.5).astype(jnp.float32)
    got3 = jax.block_until_ready(MultiClassBCELoss()(outputs3, targets3))
    want3 = _reference(outputs3, targets3, None, use_weight_mask=False,
                       use_focal_weights=False, focus_param=2, balance_param=0.25)
    ok &= bool(jnp.allclose(got3, want3, rtol=1e-5, atol=1e-5))

    # Case 4: exercise the multi-row-block path (megacore split axis, clamped
    # duplicate tail block, ragged last row block, grouped accumulate) on a
    # modest input by shrinking the tile budget temporarily.
    _saved_budget = _TARGET_TILE_BYTES
    _TARGET_TILE_BYTES = 256 * 1024
    B4, C4 = 136, 2048
    outputs4 = jax.random.normal(k3, (B4, C4), dtype=jnp.float32)
    targets4 = (jax.random.uniform(k4, (B4, C4)) > 0.5).astype(jnp.float32)
    got4 = jax.block_until_ready(MultiClassBCELoss()(outputs4, targets4))
    want4 = _reference(outputs4, targets4, None, use_weight_mask=False,
                       use_focal_weights=False, focus_param=2, balance_param=0.25)
    ok &= bool(jnp.allclose(got4, want4, rtol=1e-4, atol=1e-5))
    _TARGET_TILE_BYTES = _saved_budget

    if ok:
        print("KERNEL_OK")
    else:
        print("MISMATCH", got, want, got2, want2, got3, want3, got4, want4)
</pallas_src>

<mosaic_0001>
module attributes {stable_mosaic.version = 11 : i64} {
  func.func @kernel(%arg0: i32, %arg1: i32, %arg2: i32, %arg3: memref<1x2048xf32, #tpu.memory_space<vmem>>, %arg4: memref<1x2048xf32, #tpu.memory_space<vmem>>, %arg5: memref<1x2048xf32, #tpu.memory_space<vmem>>) attributes {dimension_semantics = [#tpu.dimension_semantics<parallel>, #tpu.dimension_semantics<parallel>, #tpu.dimension_semantics<arbitrary>], iteration_bounds = array<i64: 1, 1, 1>, scalar_prefetch = 0 : i64, scratch_operands = 0 : i64, tpu.core_type = #tpu.core_type<tc>, window_params = [{transform_indices = @transform_0, window_bounds = array<i64: 1, 2048>}, {transform_indices = @transform_1, window_bounds = array<i64: 1, 2048>}, {transform_indices = @transform_2, window_bounds = array<i64: 1, 2048>}]} {
    %c0_i32 = arith.constant 0 : i32
    %0 = arith.cmpi eq, %arg2, %c0_i32 : i32
    %1 = arith.extui %0 : i1 to i32
    %c0_i32_0 = arith.constant 0 : i32
    %2 = arith.cmpi ne, %1, %c0_i32_0 : i32
    scf.if %2 {
      %cst_9 = arith.constant 0.000000e+00 : f32
      %18 = vector.broadcast %cst_9 : f32 to vector<1x2048xf32>
      %c0_10 = arith.constant 0 : index
      %c0_11 = arith.constant 0 : index
      %19 = vector.load %arg5[%c0_10, %c0_11] : memref<1x2048xf32, #tpu.memory_space<vmem>>, vector<1x2048xf32>
      tpu.vector_store %arg5[%c0_10, %c0_11], %18 {strides = array<i32>} : memref<1x2048xf32, #tpu.memory_space<vmem>>, vector<1x2048xf32>,
    } else {
    }
    %c0 = arith.constant 0 : index
    %c0_1 = arith.constant 0 : index
    %3 = vector.load %arg3[%c0, %c0_1] : memref<1x2048xf32, #tpu.memory_space<vmem>>, vector<1x2048xf32>
    %c0_2 = arith.constant 0 : index
    %c0_3 = arith.constant 0 : index
    %4 = vector.load %arg4[%c0_2, %c0_3] : memref<1x2048xf32, #tpu.memory_space<vmem>>, vector<1x2048xf32>
    %cst = arith.constant 0.000000e+00 : f32
    %5 = vector.broadcast %cst : f32 to vector<1x2048xf32>
    %6 = arith.maximumf %3, %5 : vector<1x2048xf32>
    %7 = arith.mulf %3, %4 : vector<1x2048xf32>
    %8 = arith.subf %6, %7 : vector<1x2048xf32>
    %9 = math.absf %3 : vector<1x2048xf32>
    %cst_4 = arith.constant 0.000000e+00 : f32
    %10 = vector.broadcast %cst_4 : f32 to vector<1x2048xf32>
    %11 = arith.subf %10, %9 : vector<1x2048xf32>
    %12 = math.exp %11 : vector<1x2048xf32>
    %13 = math.log1p %12 : vector<1x2048xf32>
    %14 = arith.addf %8, %13 : vector<1x2048xf32>
    %c0_5 = arith.constant 0 : index
    %c0_6 = arith.constant 0 : index
    %15 = vector.load %arg5[%c0_5, %c0_6] : memref<1x2048xf32, #tpu.memory_space<vmem>>, vector<1x2048xf32>
    %16 = arith.addf %15, %14 : vector<1x2048xf32>
    %c0_7 = arith.constant 0 : index
    %c0_8 = arith.constant 0 : index
    %17 = vector.load %arg5[%c0_7, %c0_8] : memref<1x2048xf32, #tpu.memory_space<vmem>>, vector<1x2048xf32>
    tpu.vector_store %arg5[%c0_7, %c0_8], %16 {strides = array<i32>} : memref<1x2048xf32, #tpu.memory_space<vmem>>, vector<1x2048xf32>,
    return
  }
  func.func @transform_0(%arg0: i32, %arg1: i32, %arg2: i32) -> (i32, i32) {
    %c1_i32 = arith.constant 1 : i32
    %0 = arith.muli %arg0, %c1_i32 : i32
    %1 = arith.addi %0, %arg2 : i32
    %c0_i32 = arith.constant 0 : i32
    return %1, %arg1 : i32, i32
  }
  func.func @transform_1(%arg0: i32, %arg1: i32, %arg2: i32) -> (i32, i32) {
    %c1_i32 = arith.constant 1 : i32
    %0 = arith.muli %arg0, %c1_i32 : i32
    %1 = arith.addi %0, %arg2 : i32
    %c0_i32 = arith.constant 0 : i32
    return %1, %arg1 : i32, i32
  }
  func.func @transform_2(%arg0: i32, %arg1: i32, %arg2: i32) -> (i32, i32) {
    %c0_i32 = arith.constant 0 : i32
    return %arg0, %arg1 : i32, i32
  }
}

</mosaic_0001>

<bundles_post_ra>
// kernel: a_call__.1
= control target key start
LH: loop header
LB: loop body
LE: loop exit
PB: predicated region body
PF: predicated region fallthrough
CT: control target
= control target key end

     0   :  { %s153_s0 = inlined_call_operand.vmem [shape: f32[1,2048], index: 0, kind: input, shape index: {}]   ;;  %s154_s1 = inlined_call_operand.vmem [shape: f32[1,2048], index: 1, kind: input, shape index: {}]   ;;  %s155_s2 = inlined_call_operand.vmem [shape: f32[1,2048], index: 2, kind: output, shape index: {}]  }
   0x1   :  { %v51_v0 = vld [vmem:[%s153_s0] sm:$0xff]  ;;  %v52_v1 = vld [vmem:[%s153_s0 + $0x8] sm:$0xff] }
   0x2   :  { %v61_v2 = vand.u32 2147483647, %v51_v0  ;;  %v62_v3 = vand.u32 2147483647, %v52_v1  ;;  %v53_v12 = vld [vmem:[%s154_s1] sm:$0xff]  ;;  %v54_v15 = vld [vmem:[%s154_s1 + $0x8] sm:$0xff] }
   0x3   :  { %v55_v17 = vmax.f32 %v51_v0, 0.0  ;;  %v57_v18 = vmul.f32 %v53_v12, %v51_v0  ;;  %v56_v21 = vmax.f32 %v52_v1, 0.0  ;;  %v58_v22 = vmul.f32 %v54_v15, %v52_v1 }
   0x4   :  { %v63_v4 = vsub.f32 0.0, %v61_v2  ;;  %v64_v5 = vsub.f32 0.0, %v62_v3 }
   0x5   :  { %v59_v26 = vsub.f32 %v55_v17, %v57_v18  ;;  %v60_v30 = vsub.f32 %v56_v21, %v58_v22 }
   0x6   :  { %v65_v6 = vmul.f32 1.442695, %v63_v4  ;;  %v67_v7 = vmul.f32 1.442695, %v64_v5 }
   0x8   :  { %112 = vpow2.f32 %v65_v6 }
   0x9   :  { %114 = vpow2.f32 %v67_v7 }
   0xe   :  { %v113_v8 = vpop.eup %112 }
   0xf   :  { %v115_v9 = vpop.eup %114  ;;  %v69_v10 = vadd.f32 1.0, %v113_v8  ;;  %v72_v11 = vmul.f32 -0.5, %v113_v8  ;;  %v75_v19 = vand.u32 2147483647, %v113_v8 }
  0x10   :  { %v78_v13 = vadd.f32 1.0, %v115_v9  ;;  %v81_v14 = vmul.f32 -0.5, %v115_v9  ;;  %v84_v23 = vand.u32 2147483647, %v115_v9 }
  0x11   :  { %116 = vlog2.f32 %v69_v10  ;;  %v73_v16 = vadd.f32 1.0, %v72_v11  ;;  %vm76_vm0 = vcmp.lt.f32.partialorder %v75_v19, 0.0004427343 }
  0x12   :  { %118 = vlog2.f32 %v78_v13  ;;  %v82_v20 = vadd.f32 1.0, %v81_v14  ;;  %vm85_vm1 = vcmp.lt.f32.partialorder %v84_v23, 0.0004427343 }
  0x13   :  { %v74_v24 = vmul.f32 %v113_v8, %v73_v16 }
  0x14   :  { %v83_v27 = vmul.f32 %v115_v9, %v82_v20 }
  0x17   :  { %v117_v25 = vpop.eup %116 }
  0x18   :  { %v119_v28 = vpop.eup %118  ;;  %v71_v29 = vmul.f32 0.6931472, %v117_v25 }
  0x19   :  { %v80_v31 = vmul.f32 0.6931472, %v119_v28 }
  0x1a   :  { %v77_v32 = vsel %vm76_vm0, %v74_v24, %v71_v29 }
  0x1b   :  { %v87_v33 = vadd.f32 %v77_v32, %v59_v26  ;;  %v86_v34 = vsel %vm85_vm1, %v83_v27, %v80_v31 }
  0x1c   :  { %v88_v35 = vadd.f32 %v86_v34, %v60_v30 }
  0x1d   :  { %93 = vst [vmem:[%s155_s2] sm:$0xff] %v87_v33 }
  0x1e   :  { %94 = vst [vmem:[%s155_s2 + $0x8] sm:$0xff] %v88_v35 }

</bundles_post_ra>
